<compile_context>
chip_gen: v7x
topology: tpu7x:2x2x1
jax: 0.10.0
libtpu: 0.0.40
codegen_flags: <defaults>
</compile_context>

<pallas_src>
import functools

import jax
import jax.numpy as jnp
from jax.experimental import pallas as pl
from jax.experimental.pallas import tpu as pltpu


def _dwsep_kernel(x_ref, dwcol_ref, mask_ref, pwbd_ref, bias_ref, o_ref, *,
                  shifts):
    """Single-invocation fused depthwise-separable conv (whole batch).

    x_ref    : (B*Cin, H*W)     VMEM  lane-dense flattened input
    dwcol_ref: (K*K, B*Cin, 1)  VMEM  per-tap depthwise weights (per row)
    mask_ref : (K*K, 1, H*W)    VMEM  per-tap 0/1 boundary masks (f32)
    pwbd_ref : (B*Cout, B*Cin)  VMEM  block-diagonal pointwise weights
    bias_ref : (B*Cout, 1)      VMEM  pointwise bias (+ folded depthwise bias)
    o_ref    : (B*Cout, H*W)    VMEM  lane-dense flattened output
    shifts   : static tuple of K*K lane-roll amounts (jnp.roll semantics)
    """
    x = x_ref[...].astype(jnp.float32)                     # (B*Cin, H*W)

    # --- Depthwise KxK conv: one lane-roll (XLU) + two VPU multiplies + one
    # add per tap, over full (B*Cin, H*W) slabs (~100% lane utilisation).
    acc = None
    for t, shift in enumerate(shifts):
        shifted = pltpu.roll(x, shift=shift, axis=1) if shift else x
        term = shifted * dwcol_ref[t] * mask_ref[t]        # (B*Cin, H*W)
        acc = term if acc is None else acc + term

    # --- Pointwise 1x1 conv for the whole batch as a single MXU matmul with
    # a block-diagonal weight matrix; depthwise bias is already folded into
    # bias_ref by the wrapper.
    out = jnp.dot(pwbd_ref[...], acc, preferred_element_type=jnp.float32)
    out = out + bias_ref[...]                              # (B*Cout, H*W)

    o_ref[...] = out.astype(o_ref.dtype)                   # one dense store


def depthwise_sep_conv(x_nchw, dw_w, dw_b, pw_w, pw_b, *,
                       kernel_size=3, stride=1, dilation=1):
    """x_nchw: (B, Cin, H, W); dw_w: (Cin, 1, K, K); pw_w: (Cout, Cin, 1, 1).
    Returns NCHW output, matching the PyTorch module (default BatchNorm=True)."""
    assert stride == 1, "only stride=1 (module default) supported"
    B, Cin, H, W = x_nchw.shape
    Cout = pw_w.shape[0]
    K = kernel_size
    HW = H * W

    # padding_fix semantics
    k_eff = K + (K - 1) * (dilation - 1)
    pad_total = k_eff - 1
    pad_beg = pad_total // 2

    f32 = jnp.float32

    # ---- Per-tap static lane shifts and boundary masks (wrapper-side, tiny).
    # Output position p = h*W + w needs source x[h+dh, w+dw]; realised as a
    # circular lane shift of the flattened image plus a validity mask (the
    # mask zeroes exactly what the original zero padding would have zeroed,
    # including row-spill / wrap-around positions).
    hh = jnp.arange(H, dtype=jnp.int32)[:, None]
    ww = jnp.arange(W, dtype=jnp.int32)[None, :]
    shifts = []
    mask_rows = []
    for kh in range(K):
        for kw in range(K):
            dh = kh * dilation - pad_beg
            dw = kw * dilation - pad_beg
            s = dh * W + dw                      # out[p] reads in[(p+s) % HW]
            shifts.append((-s) % HW)             # jnp.roll-style shift amount
            m = ((hh + dh >= 0) & (hh + dh < H) &
                 (ww + dw >= 0) & (ww + dw < W))
            mask_rows.append(m.astype(f32).reshape(1, HW))
    mask = jnp.stack(mask_rows)                             # (K*K, 1, HW)

    # ---- Per-tap, per-row depthwise weights (row index = b*Cin + ci).
    dw_taps = dw_w[:, 0, :, :].astype(f32).reshape(Cin, K * K).T   # (K*K, Cin)
    dwcol = jnp.tile(dw_taps, (1, B)).reshape(K * K, B * Cin, 1)

    # ---- Block-diagonal pointwise weights: one matmul covers the batch.
    pw2 = pw_w[:, :, 0, 0].astype(f32)                      # (Cout, Cin)
    eye = jnp.eye(B, dtype=f32)
    pw_bd = jnp.einsum("ab,oc->aobc", eye, pw2).reshape(B * Cout, B * Cin)

    # ---- Fold depthwise bias into the pointwise bias (exact algebra).
    pwb_eff = pw_b.astype(f32) + pw2 @ dw_b.astype(f32)     # (Cout,)
    bias_col = jnp.tile(pwb_eff, (B,)).reshape(B * Cout, 1)

    x_flat = x_nchw.reshape(B * Cin, HW)                    # free reshape

    kernel = functools.partial(_dwsep_kernel, shifts=tuple(shifts))
    vmem_spec = pl.BlockSpec(memory_space=pltpu.MemorySpace.VMEM)

    out_flat = pl.pallas_call(
        kernel,
        out_shape=jax.ShapeDtypeStruct((B * Cout, HW), x_nchw.dtype),
        in_specs=[vmem_spec] * 5,
        out_specs=vmem_spec,
    )(x_flat, dwcol, mask, pw_bd, bias_col)

    return out_flat.reshape(B, Cout, H, W)                  # free reshape


def _reference(x_nchw, dw_w, dw_b, pw_w, pw_b, *, kernel_size=3, dilation=1):
    """Pure-JAX reference matching the PyTorch forward (defaults)."""
    K = kernel_size
    Cin = x_nchw.shape[1]
    k_eff = K + (K - 1) * (dilation - 1)
    pad_total = k_eff - 1
    pb, pe = pad_total // 2, pad_total - pad_total // 2
    xp = jnp.pad(x_nchw, ((0, 0), (0, 0), (pb, pe), (pb, pe)))
    y = jax.lax.conv_general_dilated(
        xp, dw_w, window_strides=(1, 1), padding="VALID",
        rhs_dilation=(dilation, dilation), feature_group_count=Cin,
        dimension_numbers=("NCHW", "OIHW", "NCHW"))
    y = y + dw_b[None, :, None, None]
    z = jax.lax.conv_general_dilated(
        y, pw_w, window_strides=(1, 1), padding="VALID",
        dimension_numbers=("NCHW", "OIHW", "NCHW"))
    z = z + pw_b[None, :, None, None]
    return z


if __name__ == "__main__":
    B, Cin, Cout, H, W, K = 2, 4, 8, 16, 16, 3

    key = jax.random.PRNGKey(0)
    kx, k1, k2, k3, k4 = jax.random.split(key, 5)

    x = jax.random.normal(kx, (B, Cin, H, W), dtype=jnp.float32)
    # Parameter shapes follow nn.Conv2d in the module's __init__.
    dw_w = jax.random.normal(k1, (Cin, 1, K, K), dtype=jnp.float32) * 0.1
    dw_b = jax.random.normal(k2, (Cin,), dtype=jnp.float32) * 0.1
    pw_w = jax.random.normal(k3, (Cout, Cin, 1, 1), dtype=jnp.float32) * 0.1
    pw_b = jax.random.normal(k4, (Cout,), dtype=jnp.float32) * 0.1

    out = depthwise_sep_conv(x, dw_w, dw_b, pw_w, pw_b, kernel_size=K)
    out = jax.block_until_ready(out)

    ref = _reference(x, dw_w, dw_b, pw_w, pw_b, kernel_size=K)
    assert out.shape == (B, Cout, H, W)
    assert jnp.max(jnp.abs(out - ref)) < 1e-4, "mismatch vs reference"

    print("KERNEL_OK")
</pallas_src>

<mosaic_0001>
module attributes {stable_mosaic.version = 11 : i64} {
  func.func @_dwsep_kernel(%arg0: memref<8x256xf32, #tpu.memory_space<vmem>>, %arg1: memref<9x8x1xf32, #tpu.memory_space<vmem>>, %arg2: memref<9x1x256xf32, #tpu.memory_space<vmem>>, %arg3: memref<16x8xf32, #tpu.memory_space<vmem>>, %arg4: memref<16x1xf32, #tpu.memory_space<vmem>>, %arg5: memref<16x256xf32, #tpu.memory_space<vmem>>) attributes {dimension_semantics = [], scalar_prefetch = 0 : i64, scratch_operands = 0 : i64, tpu.core_type = #tpu.core_type<tc>} {
    %c0 = arith.constant 0 : index
    %c0_0 = arith.constant 0 : index
    %0 = vector.load %arg0[%c0, %c0_0] : memref<8x256xf32, #tpu.memory_space<vmem>>, vector<8x256xf32>
    %c17_i32 = arith.constant 17 : i32
    %1 = tpu.dynamic_rotate %0 by %c17_i32 dim 1 : vector<8x256xf32>, i32 -> vector<8x256xf32>
    %c0_1 = arith.constant 0 : index
    %c0_2 = arith.constant 0 : index
    %c0_3 = arith.constant 0 : index
    %2 = vector.load %arg1[%c0_1, %c0_2, %c0_3] : memref<9x8x1xf32, #tpu.memory_space<vmem>>, vector<1x8x1xf32>
    %3 = vector.shape_cast %2 : vector<1x8x1xf32> to vector<8x1xf32>
    %4 = vector.broadcast %3 : vector<8x1xf32> to vector<8x256xf32>
    %5 = arith.mulf %1, %4 : vector<8x256xf32>
    %c0_4 = arith.constant 0 : index
    %c0_5 = arith.constant 0 : index
    %c0_6 = arith.constant 0 : index
    %6 = vector.load %arg2[%c0_4, %c0_5, %c0_6] : memref<9x1x256xf32, #tpu.memory_space<vmem>>, vector<1x1x256xf32>
    %7 = vector.shape_cast %6 : vector<1x1x256xf32> to vector<1x256xf32>
    %8 = vector.broadcast %7 : vector<1x256xf32> to vector<8x256xf32>
    %9 = arith.mulf %5, %8 : vector<8x256xf32>
    %c16_i32 = arith.constant 16 : i32
    %10 = tpu.dynamic_rotate %0 by %c16_i32 dim 1 : vector<8x256xf32>, i32 -> vector<8x256xf32>
    %c1 = arith.constant 1 : index
    %c0_7 = arith.constant 0 : index
    %c0_8 = arith.constant 0 : index
    %11 = vector.load %arg1[%c1, %c0_7, %c0_8] : memref<9x8x1xf32, #tpu.memory_space<vmem>>, vector<1x8x1xf32>
    %12 = vector.shape_cast %11 : vector<1x8x1xf32> to vector<8x1xf32>
    %13 = vector.broadcast %12 : vector<8x1xf32> to vector<8x256xf32>
    %14 = arith.mulf %10, %13 : vector<8x256xf32>
    %c1_9 = arith.constant 1 : index
    %c0_10 = arith.constant 0 : index
    %c0_11 = arith.constant 0 : index
    %15 = vector.load %arg2[%c1_9, %c0_10, %c0_11] : memref<9x1x256xf32, #tpu.memory_space<vmem>>, vector<1x1x256xf32>
    %16 = vector.shape_cast %15 : vector<1x1x256xf32> to vector<1x256xf32>
    %17 = vector.broadcast %16 : vector<1x256xf32> to vector<8x256xf32>
    %18 = arith.mulf %14, %17 : vector<8x256xf32>
    %19 = arith.addf %9, %18 : vector<8x256xf32>
    %c15_i32 = arith.constant 15 : i32
    %20 = tpu.dynamic_rotate %0 by %c15_i32 dim 1 : vector<8x256xf32>, i32 -> vector<8x256xf32>
    %c2 = arith.constant 2 : index
    %c0_12 = arith.constant 0 : index
    %c0_13 = arith.constant 0 : index
    %21 = vector.load %arg1[%c2, %c0_12, %c0_13] : memref<9x8x1xf32, #tpu.memory_space<vmem>>, vector<1x8x1xf32>
    %22 = vector.shape_cast %21 : vector<1x8x1xf32> to vector<8x1xf32>
    %23 = vector.broadcast %22 : vector<8x1xf32> to vector<8x256xf32>
    %24 = arith.mulf %20, %23 : vector<8x256xf32>
    %c2_14 = arith.constant 2 : index
    %c0_15 = arith.constant 0 : index
    %c0_16 = arith.constant 0 : index
    %25 = vector.load %arg2[%c2_14, %c0_15, %c0_16] : memref<9x1x256xf32, #tpu.memory_space<vmem>>, vector<1x1x256xf32>
    %26 = vector.shape_cast %25 : vector<1x1x256xf32> to vector<1x256xf32>
    %27 = vector.broadcast %26 : vector<1x256xf32> to vector<8x256xf32>
    %28 = arith.mulf %24, %27 : vector<8x256xf32>
    %29 = arith.addf %19, %28 : vector<8x256xf32>
    %c1_i32 = arith.constant 1 : i32
    %30 = tpu.dynamic_rotate %0 by %c1_i32 dim 1 : vector<8x256xf32>, i32 -> vector<8x256xf32>
    %c3 = arith.constant 3 : index
    %c0_17 = arith.constant 0 : index
    %c0_18 = arith.constant 0 : index
    %31 = vector.load %arg1[%c3, %c0_17, %c0_18] : memref<9x8x1xf32, #tpu.memory_space<vmem>>, vector<1x8x1xf32>
    %32 = vector.shape_cast %31 : vector<1x8x1xf32> to vector<8x1xf32>
    %33 = vector.broadcast %32 : vector<8x1xf32> to vector<8x256xf32>
    %34 = arith.mulf %30, %33 : vector<8x256xf32>
    %c3_19 = arith.constant 3 : index
    %c0_20 = arith.constant 0 : index
    %c0_21 = arith.constant 0 : index
    %35 = vector.load %arg2[%c3_19, %c0_20, %c0_21] : memref<9x1x256xf32, #tpu.memory_space<vmem>>, vector<1x1x256xf32>
    %36 = vector.shape_cast %35 : vector<1x1x256xf32> to vector<1x256xf32>
    %37 = vector.broadcast %36 : vector<1x256xf32> to vector<8x256xf32>
    %38 = arith.mulf %34, %37 : vector<8x256xf32>
    %39 = arith.addf %29, %38 : vector<8x256xf32>
    %c4 = arith.constant 4 : index
    %c0_22 = arith.constant 0 : index
    %c0_23 = arith.constant 0 : index
    %40 = vector.load %arg1[%c4, %c0_22, %c0_23] : memref<9x8x1xf32, #tpu.memory_space<vmem>>, vector<1x8x1xf32>
    %41 = vector.shape_cast %40 : vector<1x8x1xf32> to vector<8x1xf32>
    %42 = vector.broadcast %41 : vector<8x1xf32> to vector<8x256xf32>
    %43 = arith.mulf %0, %42 : vector<8x256xf32>
    %c4_24 = arith.constant 4 : index
    %c0_25 = arith.constant 0 : index
    %c0_26 = arith.constant 0 : index
    %44 = vector.load %arg2[%c4_24, %c0_25, %c0_26] : memref<9x1x256xf32, #tpu.memory_space<vmem>>, vector<1x1x256xf32>
    %45 = vector.shape_cast %44 : vector<1x1x256xf32> to vector<1x256xf32>
    %46 = vector.broadcast %45 : vector<1x256xf32> to vector<8x256xf32>
    %47 = arith.mulf %43, %46 : vector<8x256xf32>
    %48 = arith.addf %39, %47 : vector<8x256xf32>
    %c255_i32 = arith.constant 255 : i32
    %49 = tpu.dynamic_rotate %0 by %c255_i32 dim 1 : vector<8x256xf32>, i32 -> vector<8x256xf32>
    %c5 = arith.constant 5 : index
    %c0_27 = arith.constant 0 : index
    %c0_28 = arith.constant 0 : index
    %50 = vector.load %arg1[%c5, %c0_27, %c0_28] : memref<9x8x1xf32, #tpu.memory_space<vmem>>, vector<1x8x1xf32>
    %51 = vector.shape_cast %50 : vector<1x8x1xf32> to vector<8x1xf32>
    %52 = vector.broadcast %51 : vector<8x1xf32> to vector<8x256xf32>
    %53 = arith.mulf %49, %52 : vector<8x256xf32>
    %c5_29 = arith.constant 5 : index
    %c0_30 = arith.constant 0 : index
    %c0_31 = arith.constant 0 : index
    %54 = vector.load %arg2[%c5_29, %c0_30, %c0_31] : memref<9x1x256xf32, #tpu.memory_space<vmem>>, vector<1x1x256xf32>
    %55 = vector.shape_cast %54 : vector<1x1x256xf32> to vector<1x256xf32>
    %56 = vector.broadcast %55 : vector<1x256xf32> to vector<8x256xf32>
    %57 = arith.mulf %53, %56 : vector<8x256xf32>
    %58 = arith.addf %48, %57 : vector<8x256xf32>
    %c241_i32 = arith.constant 241 : i32
    %59 = tpu.dynamic_rotate %0 by %c241_i32 dim 1 : vector<8x256xf32>, i32 -> vector<8x256xf32>
    %c6 = arith.constant 6 : index
    %c0_32 = arith.constant 0 : index
    %c0_33 = arith.constant 0 : index
    %60 = vector.load %arg1[%c6, %c0_32, %c0_33] : memref<9x8x1xf32, #tpu.memory_space<vmem>>, vector<1x8x1xf32>
    %61 = vector.shape_cast %60 : vector<1x8x1xf32> to vector<8x1xf32>
    %62 = vector.broadcast %61 : vector<8x1xf32> to vector<8x256xf32>
    %63 = arith.mulf %59, %62 : vector<8x256xf32>
    %c6_34 = arith.constant 6 : index
    %c0_35 = arith.constant 0 : index
    %c0_36 = arith.constant 0 : index
    %64 = vector.load %arg2[%c6_34, %c0_35, %c0_36] : memref<9x1x256xf32, #tpu.memory_space<vmem>>, vector<1x1x256xf32>
    %65 = vector.shape_cast %64 : vector<1x1x256xf32> to vector<1x256xf32>
    %66 = vector.broadcast %65 : vector<1x256xf32> to vector<8x256xf32>
    %67 = arith.mulf %63, %66 : vector<8x256xf32>
    %68 = arith.addf %58, %67 : vector<8x256xf32>
    %c240_i32 = arith.constant 240 : i32
    %69 = tpu.dynamic_rotate %0 by %c240_i32 dim 1 : vector<8x256xf32>, i32 -> vector<8x256xf32>
    %c7 = arith.constant 7 : index
    %c0_37 = arith.constant 0 : index
    %c0_38 = arith.constant 0 : index
    %70 = vector.load %arg1[%c7, %c0_37, %c0_38] : memref<9x8x1xf32, #tpu.memory_space<vmem>>, vector<1x8x1xf32>
    %71 = vector.shape_cast %70 : vector<1x8x1xf32> to vector<8x1xf32>
    %72 = vector.broadcast %71 : vector<8x1xf32> to vector<8x256xf32>
    %73 = arith.mulf %69, %72 : vector<8x256xf32>
    %c7_39 = arith.constant 7 : index
    %c0_40 = arith.constant 0 : index
    %c0_41 = arith.constant 0 : index
    %74 = vector.load %arg2[%c7_39, %c0_40, %c0_41] : memref<9x1x256xf32, #tpu.memory_space<vmem>>, vector<1x1x256xf32>
    %75 = vector.shape_cast %74 : vector<1x1x256xf32> to vector<1x256xf32>
    %76 = vector.broadcast %75 : vector<1x256xf32> to vector<8x256xf32>
    %77 = arith.mulf %73, %76 : vector<8x256xf32>
    %78 = arith.addf %68, %77 : vector<8x256xf32>
    %c239_i32 = arith.constant 239 : i32
    %79 = tpu.dynamic_rotate %0 by %c239_i32 dim 1 : vector<8x256xf32>, i32 -> vector<8x256xf32>
    %c8 = arith.constant 8 : index
    %c0_42 = arith.constant 0 : index
    %c0_43 = arith.constant 0 : index
    %80 = vector.load %arg1[%c8, %c0_42, %c0_43] : memref<9x8x1xf32, #tpu.memory_space<vmem>>, vector<1x8x1xf32>
    %81 = vector.shape_cast %80 : vector<1x8x1xf32> to vector<8x1xf32>
    %82 = vector.broadcast %81 : vector<8x1xf32> to vector<8x256xf32>
    %83 = arith.mulf %79, %82 : vector<8x256xf32>
    %c8_44 = arith.constant 8 : index
    %c0_45 = arith.constant 0 : index
    %c0_46 = arith.constant 0 : index
    %84 = vector.load %arg2[%c8_44, %c0_45, %c0_46] : memref<9x1x256xf32, #tpu.memory_space<vmem>>, vector<1x1x256xf32>
    %85 = vector.shape_cast %84 : vector<1x1x256xf32> to vector<1x256xf32>
    %86 = vector.broadcast %85 : vector<1x256xf32> to vector<8x256xf32>
    %87 = arith.mulf %83, %86 : vector<8x256xf32>
    %88 = arith.addf %78, %87 : vector<8x256xf32>
    %c0_47 = arith.constant 0 : index
    %c0_48 = arith.constant 0 : index
    %89 = vector.load %arg3[%c0_47, %c0_48] : memref<16x8xf32, #tpu.memory_space<vmem>>, vector<16x8xf32>
    %cst = arith.constant dense<0.000000e+00> : vector<16x256xf32>
    %90 = tpu.matmul %89, %88, %cst {dimension_numbers = #tpu.dot_dimension_numbers<[1], [0], [0], [1], [0, 0, 1, 1], [], []>} : vector<16x8xf32>, vector<8x256xf32>, vector<16x256xf32> -> vector<16x256xf32>
    %c0_49 = arith.constant 0 : index
    %c0_50 = arith.constant 0 : index
    %91 = vector.load %arg4[%c0_49, %c0_50] : memref<16x1xf32, #tpu.memory_space<vmem>>, vector<16x1xf32>
    %92 = vector.broadcast %91 : vector<16x1xf32> to vector<16x256xf32>
    %93 = arith.addf %90, %92 : vector<16x256xf32>
    %c0_51 = arith.constant 0 : index
    %c0_52 = arith.constant 0 : index
    %94 = vector.load %arg5[%c0_51, %c0_52] : memref<16x256xf32, #tpu.memory_space<vmem>>, vector<16x256xf32>
    tpu.vector_store %arg5[%c0_51, %c0_52], %93 {strides = array<i32>} : memref<16x256xf32, #tpu.memory_space<vmem>>, vector<16x256xf32>,
    return
  }
}

</mosaic_0001>

<bundles_post_ra>
// kernel: tpu_custom_call.1
= control target key start
LH: loop header
LB: loop body
LE: loop exit
PB: predicated region body
PF: predicated region fallthrough
CT: control target
= control target key end

     0   :  { %v487_v2 = vmov 0   ;;  %s686_s0 = inlined_call_operand.vmem [shape: f32[8,256], index: 0, kind: input, shape index: {}]   ;;  %s687_s1 = inlined_call_operand.vmem [shape: f32[9,8,1], index: 1, kind: input, shape index: {}]   ;;  %s688_s2 = inlined_call_operand.vmem [shape: f32[9,1,256], index: 2, kind: input, shape index: {}]   ;;  %s689_s3 = inlined_call_operand.vmem [shape: f32[16,8], index: 3, kind: input, shape index: {}]   ;;  %s690_s4 = inlined_call_operand.vmem [shape: f32[16,1], index: 4, kind: input, shape index: {}]   ;;  %s691_s5 = inlined_call_operand.hbm [shape: f32[16,256], index: 5, kind: output, shape index: {}]  }
   0x1   :  { %v431_v0 = vld [vmem:[%s687_s1 + $0x10] sm:$0xff]  ;;  %v32_v1 = vld [vmem:[%s687_s1] sm:$0xff]  ;;  %462 = vset.pattern.permute.xlu1 %v487_v2  ;;  %461 = vset.pattern.permute.xlu0 %v487_v2  ;;  %v433_v3 = vld [vmem:[%s687_s1 + $0x18] sm:$0xff] }
   0x2   :  { %98 = vperm.xlu1 %462, %v431_v0   ;;  %35 = vperm.xlu0 %461, %v32_v1   ;;  %v429_v4 = vld [vmem:[%s687_s1 + $0x8] sm:$0xff] }
   0x3   :  { %10 = vsyncpa [#allocation3], 0  ;;  %v544_v5 = vld [vmem:[%s686_s0 + $0x8] sm:$0xff]  ;;  %v549_v6 = vld [vmem:[%s686_s0] sm:$0xff]  ;;  %s488_s30 = smov 17   ;;  %s489_s6 = smov 16   ;;  %v27_v23 = vlaneseq }
   0x4   :  { %v435_v7 = vld [vmem:[%s687_s1 + $0x20] sm:$0xff]  ;;  %s490_s9 = smov 15   ;;  %v437_v8 = vld [vmem:[%s687_s1 + $0x28] sm:$0xff]  ;;  %s491_s11 = smov 1   ;;  %v441_v9 = vld [vmem:[%s687_s1 + $0x38] sm:$0xff]  ;;  %v496_v14 = vmov 0.0  }
   0x5   :  { %v439_v10 = vld [vmem:[%s687_s1 + $0x30] sm:$0xff]  ;;  %s492_s16 = smov 127   ;;  %v443_v11 = vld [vmem:[%s687_s1 + $0x40] sm:$0xff]  ;;  %s493_s19 = smov 113   ;;  %v314_v13 = vld [vmem:[%s690_s4 + $0x8] sm:$0xff]  ;;  %396 = vmatprep.mubr.f32.mxu0 %v496_v14  ;;  %402 = vmatprep.mubr.f32.mxu1 %v496_v14  ;;  %v592_v26 = vand.u32 127, %v27_v23 }
   0x6   :  { %131 = vperm.xlu1 %462, %v433_v3   ;;  %65 = vperm.xlu0 %461, %v429_v4   ;;  %s494_s20 = smov 112   ;;  %s495_s21 = smov 111   ;;  %v313_v12 = vld [vmem:[%s690_s4] sm:$0xff]  ;;  %v43_v27 = vshrl.u32 %v27_v23, 7  ;;  %vm325_vm8 = vcmask 64512  }
   0x7   :  { %vm58_vm0 = vcmp.lt.s32.totalorder %v592_v26, 16  ;;  %v430_v30 = vld [vmem:[%s688_s2 + $0x2] sm:$0x3]  ;;  %vm29_vm1 = vcmp.lt.s32.totalorder %v592_v26, 17  ;;  %vm91_vm2 = vcmp.lt.s32.totalorder %v592_v26, 15  ;;  %vm124_vm3 = vcmp.lt.s32.totalorder %v592_v26, 1 }
   0x8   :  { %v601_v31 = vsub.s32 0, %v43_v27  ;;  %v603_v34 = vsub.s32 1, %v43_v27  ;;  %v40_v37 = vld [vmem:[%s688_s2] sm:$0x3]  ;;  %v432_v44 = vld [vmem:[%s688_s2 + $0x4] sm:$0x3] }
   0x9   :  { %v434_v53 = vld [vmem:[%s688_s2 + $0x6] sm:$0x3]  ;;  %vm183_vm4 = vcmp.lt.s32.totalorder %v592_v26, 127  ;;  %vm216_vm5 = vcmp.lt.s32.totalorder %v592_v26, 113  ;;  %vm249_vm6 = vcmp.lt.s32.totalorder %v592_v26, 112  ;;  %vm282_vm7 = vcmp.lt.s32.totalorder %v592_v26, 111 }
   0xa   :  { %25 = vrot.lane.b32.xlu1 %v544_v5, %s488_s30  ;;  %23 = vrot.lane.b32.xlu0 %v549_v6, %s488_s30  ;;  %v76_v38 = vrot.slane %v430_v30, %v601_v31  ;;  %v80_v41 = vrot.slane %v430_v30, %v603_v34  ;;  %v45_v49 = vrot.slane %v40_v37, %v601_v31  ;;  %v312_v26 = vld [vmem:[%s689_s3 + $0x8] sm:$0xff] }
   0xb   :  { %v49_v50 = vrot.slane %v40_v37, %v603_v34  ;;  %v109_v56 = vrot.slane %v432_v44, %v601_v31  ;;  %v113_v57 = vrot.slane %v432_v44, %v603_v34  ;;  %v142_v0 = vrot.slane %v434_v53, %v601_v31 }
   0xc   :  { %v146_v1 = vrot.slane %v434_v53, %v603_v34 }
   0xe   :  { %56 = vrot.lane.b32.xlu1 %v544_v5, %s489_s6  ;;  %54 = vrot.lane.b32.xlu0 %v549_v6, %s489_s6 }
  0x12   :  { %87 = vrot.lane.b32.xlu1 %v549_v6, %s490_s9  ;;  %157 = vperm.xlu0 %461, %v435_v7  }
  0x16   :  { %190 = vperm.xlu1 %462, %v437_v8   ;;  %89 = vrot.lane.b32.xlu0 %v544_v5, %s490_s9  ;;  %v436_v8 = vld [vmem:[%s688_s2 + $0x8] sm:$0x3] }
  0x1a   :  { %122 = vrot.lane.b32.xlu1 %v544_v5, %s491_s11  ;;  %120 = vrot.lane.b32.xlu0 %v549_v6, %s491_s11 }
  0x1e   :  { %256 = vperm.xlu1 %462, %v441_v9   ;;  %223 = vperm.xlu0 %461, %v439_v10  }
  0x22   :  { %181 = vrot.lane.b32.xlu1 %v544_v5, %s492_s16  ;;  %179 = vrot.lane.b32.xlu0 %v549_v6, %s492_s16 }
  0x26   :  { %212 = vrot.lane.b32.xlu1 %v549_v6, %s493_s19  ;;  %289 = vperm.xlu0 %461, %v443_v11   ;;  %v438_v11 = vld [vmem:[%s688_s2 + $0xa] sm:$0x3] }
  0x27   :  { %v201_v23 = vrot.slane %v438_v11, %v601_v31 }
  0x2a   :  { %245 = vrot.lane.b32.xlu1 %v549_v6, %s494_s20  ;;  %214 = vrot.lane.b32.xlu0 %v544_v5, %s493_s19 }
  0x2e   :  { %278 = vrot.lane.b32.xlu1 %v549_v6, %s495_s21  ;;  %247 = vrot.lane.b32.xlu0 %v544_v5, %s494_s20  ;;  %s497_s20 = smov [#allocation2]  }
  0x32   :  { %317 = vperm.xlu1 %462, %v313_v12   ;;  %280 = vrot.lane.b32.xlu0 %v544_v5, %s495_s21  ;;  %s418_s21 = sshll.u32 %s497_s20, 4  ;;  %s419_s21 = int_to_ptr.vmem [resolvable:$true] %s418_s21 }
  0x33   :  { %p468_p1 = scmp.lt.s32.totalorder %s419_s21, %s419_s21 }
  0x36   :  { %322 = vperm.xlu0 %461, %v314_v13  }
  0x81   :  { %v99_v15 = vpop.permute.xlu1 %98  ;;  %v36_v16 = vpop.permute.xlu0 %35 }
  0x85   :  { %v132_v17 = vpop.permute.xlu1 %131  ;;  %v66_v18 = vpop.permute.xlu0 %65 }
  0x89   :  { %v26_v19 = vpop.permute.xlu1 %25  ;;  %v24_v20 = vpop.permute.xlu0 %23 }
  0x8a   :  { %v30_v39 = vsel %vm29_vm1, %v24_v20, %v26_v19  ;;  %v31_v40 = vsel %vm29_vm1, %v26_v19, %v24_v20  ;;  %v440_v20 = vld [vmem:[%s688_s2 + $0xc] sm:$0x3] }
  0x8b   :  { %v38_v51 = vmul.f32 %v36_v16, %v31_v40  ;;  %v39_v52 = vmul.f32 %v36_v16, %v30_v39 }
  0x8d   :  { %v57_v21 = vpop.permute.xlu1 %56  ;;  %v55_v22 = vpop.permute.xlu0 %54  ;;  %v52_v4 = vmul.f32 %v45_v49, %v38_v51  ;;  %v53_v7 = vmul.f32 %v49_v50, %v39_v52  ;;  %v444_v52 = vld [vmem:[%s688_s2 + $0x10] sm:$0x3] }
  0x8e   :  { %v59_v35 = vsel %vm58_vm0, %v55_v22, %v57_v21  ;;  %v60_v36 = vsel %vm58_vm0, %v57_v21, %v55_v22  ;;  %v168_v21 = vrot.slane %v436_v8, %v601_v31  ;;  %v172_v22 = vrot.slane %v436_v8, %v603_v34 }
  0x8f   :  { %v68_v42 = vmul.f32 %v66_v18, %v60_v36  ;;  %v69_v43 = vmul.f32 %v66_v18, %v59_v35  ;;  %v234_v36 = vrot.slane %v440_v20, %v601_v31 }
  0x91   :  { %v88_v24 = vpop.permute.xlu1 %87  ;;  %v590_v25 = vpop.permute.xlu0 %157  ;;  %v83_v60 = vmul.f32 %v76_v38, %v68_v42  ;;  %v84_v61 = vmul.f32 %v80_v41, %v69_v43  ;;  %v442_v38 = vld [vmem:[%s688_s2 + $0xe] sm:$0x3] }
  0x92   :  { %v161_v27 = vmul.f32 %v590_v25, %v544_v5  ;;  %v271_v50 = vrot.slane %v442_v38, %v603_v34 }
  0x93   :  { %v85_v12 = vadd.f32 %v83_v60, %v52_v4  ;;  %v86_v13 = vadd.f32 %v84_v61, %v53_v7  ;;  %v304_v60 = vrot.slane %v444_v52, %v603_v34  ;;  %v300_v61 = vrot.slane %v444_v52, %v601_v31 }
  0x95   :  { %v594_v28 = vpop.permute.xlu1 %190  ;;  %v90_v29 = vpop.permute.xlu0 %89 }
  0x96   :  { %v92_v45 = vsel %vm91_vm2, %v88_v24, %v90_v29  ;;  %v93_v46 = vsel %vm91_vm2, %v90_v29, %v88_v24  ;;  %v160_v24 = vmul.f32 %v590_v25, %v549_v6  ;;  %v238_v25 = vrot.slane %v440_v20, %v603_v34 }
  0x97   :  { %v101_v58 = vmul.f32 %v99_v15, %v93_v46  ;;  %v102_v59 = vmul.f32 %v99_v15, %v92_v45  ;;  %v267_v45 = vrot.slane %v442_v38, %v601_v31 }
  0x98   :  { %v175_v44 = vmul.f32 %v168_v21, %v160_v24 }
  0x99   :  { %v123_v32 = vpop.permute.xlu1 %122  ;;  %v121_v33 = vpop.permute.xlu0 %120  ;;  %v116_v9 = vmul.f32 %v109_v56, %v101_v58  ;;  %v117_v10 = vmul.f32 %v113_v57, %v102_v59 }
  0x9a   :  { %v125_v54 = vsel %vm124_vm3, %v121_v33, %v123_v32  ;;  %v126_v55 = vsel %vm124_vm3, %v123_v32, %v121_v33  ;;  %v205_v32 = vrot.slane %v438_v11, %v603_v34 }
  0x9b   :  { %v134_v2 = vmul.f32 %v132_v17, %v126_v55  ;;  %v135_v3 = vmul.f32 %v132_v17, %v125_v54  ;;  %v118_v29 = vadd.f32 %v116_v9, %v85_v12  ;;  %v119_v30 = vadd.f32 %v117_v10, %v86_v13 }
  0x9d   :  { %v615_v47 = vpop.permute.xlu1 %256  ;;  %v224_v48 = vpop.permute.xlu0 %223  ;;  %v149_v16 = vmul.f32 %v142_v0, %v134_v2  ;;  %v150_v17 = vmul.f32 %v146_v1, %v135_v3 }
  0x9f   :  { %v151_v39 = vadd.f32 %v149_v16, %v118_v29  ;;  %v152_v6 = vadd.f32 %v150_v17, %v119_v30  ;;  %v311_v16 = vld [vmem:[%s689_s3] sm:$0xff]  ;;  %s463_s3 = scalar_lea.vmem %s419_s21, 512 }
  0xa0   :  { %p464_p0 = scmp.ne.s32.totalorder %s419_s21, %s463_s3  ;;  %p469_p2 = scmp.lt.s32.totalorder %s463_s3, %s463_s3 }
  0xa1   :  { %v182_v62 = vpop.permute.xlu1 %181  ;;  %v180_v63 = vpop.permute.xlu0 %179  ;;  %v177_v53 = vadd.f32 %v175_v44, %v151_v39 }
  0xa2   :  { %v184_v18 = vsel %vm183_vm4, %v180_v63, %v182_v62  ;;  %v185_v19 = vsel %vm183_vm4, %v182_v62, %v180_v63  ;;  %p470_p3 = por %p469_p2, %p468_p1 }
  0xa3   :  { %v193_v33 = vmul.f32 %v594_v28, %v184_v18  ;;  %v194_v35 = vmul.f32 %v594_v28, %v185_v19  ;;  %v176_v28 = vmul.f32 %v172_v22, %v161_v27 }
  0xa4   :  { %p471_p4 = pnand %p470_p3, %p464_p0 }
  0xa5   :  { %v213_v14 = vpop.permute.xlu1 %212  ;;  %v290_v15 = vpop.permute.xlu0 %289  ;;  %v208_v46 = vmul.f32 %v201_v23, %v193_v33  ;;  %v209_v49 = vmul.f32 %v205_v32, %v194_v35  ;;  %v178_v54 = vadd.f32 %v176_v28, %v152_v6 }
  0xa7   :  { %v210_v62 = vadd.f32 %v208_v46, %v177_v53  ;;  %v211_v63 = vadd.f32 %v209_v49, %v178_v54 }
  0xa9   :  { %v215_v37 = vpop.permute.xlu0 %214  ;;  %v246_v5 = vpop.permute.xlu1 %245 }
  0xaa   :  { %v217_v40 = vsel %vm216_vm5, %v213_v14, %v215_v37  ;;  %v218_v41 = vsel %vm216_vm5, %v215_v37, %v213_v14 }
  0xab   :  { %v226_v42 = vmul.f32 %v224_v48, %v217_v40  ;;  %v227_v43 = vmul.f32 %v224_v48, %v218_v41 }
  0xad   :  { %v248_v51 = vpop.permute.xlu0 %247  ;;  %v241_v56 = vmul.f32 %v234_v36, %v226_v42  ;;  %v242_v57 = vmul.f32 %v238_v25, %v227_v43  ;;  %v279_v0 = vpop.permute.xlu1 %278 }
  0xae   :  { %v250_v48 = vsel %vm249_vm6, %v246_v5, %v248_v51  ;;  %v251_v55 = vsel %vm249_vm6, %v248_v51, %v246_v5 }
  0xaf   :  { %v259_v58 = vmul.f32 %v615_v47, %v250_v48  ;;  %v260_v59 = vmul.f32 %v615_v47, %v251_v55  ;;  %v244_v10 = vadd.f32 %v242_v57, %v211_v63  ;;  %v243_v47 = vadd.f32 %v241_v56, %v210_v62 }
  0xb1   :  { %v274_v1 = vmul.f32 %v267_v45, %v259_v58  ;;  %v275_v2 = vmul.f32 %v271_v50, %v260_v59  ;;  %v281_v3 = vpop.permute.xlu0 %280 }
  0xb2   :  { %v283_v4 = vsel %vm282_vm7, %v279_v0, %v281_v3  ;;  %v284_v7 = vsel %vm282_vm7, %v281_v3, %v279_v0 }
  0xb3   :  { %v292_v8 = vmul.f32 %v290_v15, %v283_v4  ;;  %v293_v9 = vmul.f32 %v290_v15, %v284_v7  ;;  %v277_v11 = vadd.f32 %v275_v2, %v244_v10  ;;  %v276_v12 = vadd.f32 %v274_v1, %v243_v47  ;;  %v318_v15 = vpop.permute.xlu1 %317 }
  0xb5   :  { %v308_v34 = vmul.f32 %v304_v60, %v293_v9  ;;  %v307_v31 = vmul.f32 %v300_v61, %v292_v8  ;;  %v323_v17 = vpop.permute.xlu0 %322 }
  0xb7   :  { %v310_v13 = vadd.f32 %v308_v34, %v277_v11  ;;  %v309_v14 = vadd.f32 %v307_v31, %v276_v12 }
  0xb9   :  { %332 = vmatprep.subr.mxu0 %v310_v13  ;;  %447 = vmatprep.subr.mxu1 %v310_v13 }
  0xba   :  { %333 = vmatpush1.msra.mxu0 %v309_v14  ;;  %448 = vmatpush1.msra.mxu1 %v309_v14 }
  0xbb   :  { %445 = vmatmul.mubr.msk.f32.vlgmr.msra.gmra.mrb[0].mxu0 %vm325_vm8, %v311_v16  ;;  %446 = vmatmul.mubr.msk.f32.vlgmr.msra.gmra.mrb[0].mxu1 %vm325_vm8, %v312_v26 }
 0x18e   :  { %v398_v18 = vpop.f32.mrb[0].mxu0  ;;  %v404_v19 = vpop.f32.mrb[0].mxu1 }
 0x18f   :  { %v399_v20 = vadd.f32 %v398_v18, %v318_v15  ;;  %v405_v21 = vadd.f32 %v404_v19, %v323_v17  ;;  %v400_v22 = vpop.f32.mrb[1].mxu0  ;;  %v406_v23 = vpop.f32.mrb[1].mxu1 }
 0x190   :  { %v401_v24 = vadd.f32 %v400_v22, %v318_v15  ;;  %v407_v27 = vadd.f32 %v406_v23, %v323_v17 }
 0x191   :  { %409 = vst [vmem:[#allocation2] sm:$0xff] %v399_v20  ;;  %411 = vst [vmem:[#allocation2 + $0x10] sm:$0xff] %v405_v21 }
 0x192   :  { %410 = vst [vmem:[#allocation2 + $0x8] sm:$0xff] %v401_v24  ;;  %412 = vst [vmem:[#allocation2 + $0x18] sm:$0xff] %v407_v27 }
 0x193   :  { %474 = shalt.err (!%p471_p4)
}
 0x194   :  { %s475_s1 = scalar_lea.hbm %s691_s5, 512 }
 0x195   :  { %p476_p5 = scmp.ne.s32.totalorder %s691_s5, %s475_s1  ;;  %p479_p6 = scmp.lt.u32.totalorder %s475_s1, %s691_s5 }
 0x197   :  { %p481_p7 = pnand %p479_p6, %p476_p5 }
 0x199   :  { %484 = shalt.err (!%p481_p7)
}
 0x19a   :  { %s498_s27 = smov 256  }
 0x19b   :  { %424 = dma.vmem_to_hbm [thread:$0]  %s419_s21, 512, %s691_s5, [#allocation3], %s498_s27, %s498_s27, %s489_s6  }
 0x19c   :  { %485 = dma.done.wait [#allocation3], 512  }
 0x19d   :  { %486 = vsyncadd [#allocation3], 4294966784 }
 0x19e   :  { %428 = vsyncpa [#allocation3], 1 }

</bundles_post_ra>
